<compile_context>
chip_gen: v7x
topology: tpu7x:2x2x1
jax: 0.10.0
libtpu: 0.0.40
codegen_flags: <defaults>
</compile_context>

<pallas_src>
import functools

import jax
import jax.numpy as jnp
from jax.experimental import pallas as pl
from jax.experimental.pallas import tpu as pltpu


def _frank_phi_kernel(scal_ref, t_ref, o_ref):
    # scal_ref: SMEM (2,) = [exp(-theta) - 1, -1/theta]
    # t_ref / o_ref: VMEM (block_rows, lanes) tiles.
    a = scal_ref[0]
    neg_inv_theta = scal_ref[1]
    x = t_ref[...].astype(jnp.float32)
    # -1/theta * log1p(exp(-t) * (exp(-theta) - 1))
    o_ref[...] = (neg_inv_theta * jnp.log1p(a * jnp.exp(-x))).astype(o_ref.dtype)


def _frank_phi_jnp(theta_f32, t):
    """Pure-JAX fallback (small inputs / sub-lane tails)."""
    a = jnp.exp(-theta_f32) - 1.0
    neg_inv_theta = -1.0 / theta_f32
    x = t.astype(jnp.float32)
    return (neg_inv_theta * jnp.log1p(a * jnp.exp(-x))).astype(t.dtype)


def frank_phi_forward(theta, t, *, min_pallas_elems=64 * 1024):
    """theta: scalar (float), t: arbitrary-shaped array.

    Returns -1/theta * log(exp(-t) * (exp(-theta) - 1) + 1), same shape/dtype
    as t.  Inputs smaller than `min_pallas_elems` use a fused pure-JAX path
    (kernel launch + per-step overhead dominates there); pass 0 to force the
    Pallas kernel.
    """
    orig_shape = t.shape
    orig_dtype = t.dtype
    total = t.size

    theta_f32 = jnp.asarray(theta, jnp.float32)

    # --- small-input fast path ------------------------------------------
    if total < min_pallas_elems or total < 128:
        return _frank_phi_jnp(theta_f32, t)

    # Scalars computed once (scalar path, outside the kernel).
    a = jnp.exp(-theta_f32) - 1.0
    neg_inv_theta = -1.0 / theta_f32
    scalars = jnp.stack([a, neg_inv_theta])  # (2,) f32 -> SMEM

    flat = t.reshape(-1)

    # --- split off sub-lane tail (no whole-array pad/slice copies) -------
    aligned = (total // 128) * 128
    tail = flat[aligned:] if aligned != total else None
    body = flat[:aligned]

    # --- choose a lane-dense 2D layout -----------------------------------
    lanes = 128
    for cand in (2048, 1024, 512, 256):
        if aligned % cand == 0:
            lanes = cand
            break
    rows = aligned // lanes
    t2d = body.reshape(rows, lanes)

    # --- choose a row tile ------------------------------------------------
    # ~4 MiB per f32 buffer (in+out double buffered ~= 16 MiB live): past the
    # HBM-roofline knee on v5e/v6e/v7x, still comfortable in VMEM.
    MAX_BLOCK_ELEMS = 1024 * 1024
    max_block_rows = max(8, MAX_BLOCK_ELEMS // lanes)  # multiple of 8
    if rows <= 8:
        block_rows = rows  # full-dim block: no (8,128) divisibility needed
    else:
        # Keep >= ~16 grid steps so v7x's two TensorCores both get work and
        # double-buffered DMA/compute overlap has something to pipeline.
        target = ((pl.cdiv(rows, 16) + 7) // 8) * 8
        block_rows = min(max_block_rows, max(8, target))
    grid = (pl.cdiv(rows, block_rows),)  # Pallas masks the partial last block

    out2d = pl.pallas_call(
        _frank_phi_kernel,
        out_shape=jax.ShapeDtypeStruct((rows, lanes), orig_dtype),
        grid_spec=pl.GridSpec(
            grid=grid,
            in_specs=[
                pl.BlockSpec(memory_space=pltpu.MemorySpace.SMEM),
                pl.BlockSpec((block_rows, lanes), lambda i: (i, 0)),
            ],
            out_specs=pl.BlockSpec((block_rows, lanes), lambda i: (i, 0)),
        ),
        compiler_params=pltpu.CompilerParams(
            dimension_semantics=("parallel",),
            vmem_limit_bytes=32 * 1024 * 1024,  # lift v5e's 16 MiB default
        ),
    )(scalars, t2d)

    out = out2d.reshape(-1)
    if tail is not None:
        out = jnp.concatenate([out, _frank_phi_jnp(theta_f32, tail)])
    return out.reshape(orig_shape)


if __name__ == "__main__":
    key = jax.random.PRNGKey(0)
    k_theta, k_t = jax.random.split(key)

    # Deterministic "parameter" init: positive scalar theta (theta != 0).
    theta = jnp.abs(jax.random.normal(k_theta, (), jnp.float32)) + 0.5

    # Input t: small NCHW-like tensor; values >= 0 (Frank generator domain).
    t = jnp.abs(jax.random.normal(k_t, (2, 4, 16, 16), jnp.float32))

    # jit the wrapper (fuses the scalar prep / reshapes); force the Pallas
    # path so the kernel is exercised even at this small demo size.
    fwd = jax.jit(functools.partial(frank_phi_forward, min_pallas_elems=0))

    out = fwd(theta, t)
    out = jax.block_until_ready(out)

    # Reference check in plain JAX (same formula as the PyTorch module).
    ref = -1.0 / theta * jnp.log(jnp.exp(-t) * (jnp.exp(-theta) - 1.0) + 1.0)
    assert out.shape == t.shape
    assert out.dtype == t.dtype
    assert jnp.allclose(out, ref, rtol=1e-5, atol=1e-6), "mismatch vs reference"

    print("KERNEL_OK")
</pallas_src>

<mosaic_0001>
module attributes {stable_mosaic.version = 11 : i64} {
  func.func @_frank_phi_kernel(%arg0: i32, %arg1: memref<2xf32, #tpu.memory_space<smem>>, %arg2: memref<1x2048xf32, #tpu.memory_space<vmem>>, %arg3: memref<1x2048xf32, #tpu.memory_space<vmem>>) attributes {dimension_semantics = [#tpu.dimension_semantics<parallel>], iteration_bounds = array<i64: 1>, scalar_prefetch = 0 : i64, scratch_operands = 0 : i64, tpu.core_type = #tpu.core_type<tc>, window_params = [{transform_indices = @transform_0, window_bounds = array<i64: 2>}, {transform_indices = @transform_1, window_bounds = array<i64: 1, 2048>}, {transform_indices = @transform_2, window_bounds = array<i64: 1, 2048>}]} {
    %c0 = arith.constant 0 : index
    %0 = memref.load %arg1[%c0] : memref<2xf32, #tpu.memory_space<smem>>
    %c1 = arith.constant 1 : index
    %1 = memref.load %arg1[%c1] : memref<2xf32, #tpu.memory_space<smem>>
    %c0_0 = arith.constant 0 : index
    %c0_1 = arith.constant 0 : index
    %2 = vector.load %arg2[%c0_0, %c0_1] : memref<1x2048xf32, #tpu.memory_space<vmem>>, vector<1x2048xf32>
    %cst = arith.constant 0.000000e+00 : f32
    %3 = vector.broadcast %cst : f32 to vector<1x2048xf32>
    %4 = arith.subf %3, %2 : vector<1x2048xf32>
    %5 = math.exp %4 : vector<1x2048xf32>
    %6 = vector.broadcast %0 : f32 to vector<1x2048xf32>
    %7 = arith.mulf %6, %5 : vector<1x2048xf32>
    %8 = math.log1p %7 : vector<1x2048xf32>
    %9 = vector.broadcast %1 : f32 to vector<1x2048xf32>
    %10 = arith.mulf %9, %8 : vector<1x2048xf32>
    %c0_2 = arith.constant 0 : index
    %c0_3 = arith.constant 0 : index
    %11 = vector.load %arg3[%c0_2, %c0_3] : memref<1x2048xf32, #tpu.memory_space<vmem>>, vector<1x2048xf32>
    tpu.vector_store %arg3[%c0_2, %c0_3], %10 {strides = array<i32>} : memref<1x2048xf32, #tpu.memory_space<vmem>>, vector<1x2048xf32>,
    return
  }
  func.func @transform_0(%arg0: i32) -> i32 {
    %c0_i32 = arith.constant 0 : i32
    %c0_i32_0 = arith.constant 0 : i32
    return %c0_i32 : i32
  }
  func.func @transform_1(%arg0: i32) -> (i32, i32) {
    %c0_i32 = arith.constant 0 : i32
    %c0_i32_0 = arith.constant 0 : i32
    return %arg0, %c0_i32 : i32, i32
  }
  func.func @transform_2(%arg0: i32) -> (i32, i32) {
    %c0_i32 = arith.constant 0 : i32
    %c0_i32_0 = arith.constant 0 : i32
    return %arg0, %c0_i32 : i32, i32
  }
}

</mosaic_0001>

<bundles_post_ra>
// kernel: frank_phi_forward.1
= control target key start
LH: loop header
LB: loop body
LE: loop exit
PB: predicated region body
PF: predicated region fallthrough
CT: control target
= control target key end

     0   :  { %7 = vsyncpa [#allocation3], 0  ;;  %s120_s0 = inlined_call_operand.vmem [shape: f32[2], index: 0, kind: input, shape index: {}]   ;;  %s121_s1 = inlined_call_operand.vmem [shape: f32[1,2048], index: 1, kind: input, shape index: {}]   ;;  %s122_s2 = inlined_call_operand.vmem [shape: f32[1,2048], index: 2, kind: output, shape index: {}]  }
   0x1   :  { %s14_s11 = sshll.u32 %s120_s0, 4  ;;  %s15_s11 = int_to_ptr.vmem [resolvable:$true] %s14_s11 }
   0x2   :  { %s75_s12 = scalar_lea.vmem %s15_s11, 16  ;;  %p80_p1 = scmp.lt.s32.totalorder %s15_s11, %s15_s11 }
   0x3   :  { %p76_p0 = scmp.ne.s32.totalorder %s15_s11, %s75_s12  ;;  %p81_p2 = scmp.lt.s32.totalorder %s75_s12, %s75_s12 }
   0x5   :  { %p82_p3 = por %p81_p2, %p80_p1 }
   0x7   :  { %p83_p4 = pnand %p82_p3, %p76_p0 }
   0x9   :  { %86 = shalt.err (!%p83_p4)
}
   0xa   :  { %s89_s13 = smov [#allocation2]  }
   0xb   :  { %17 = dma.vmem_to_smem %s15_s11, 16, %s89_s13, [#allocation3]  }
   0xc   :  { %87 = dma.done.wait [#allocation3], 16  }
   0xd   :  { %88 = vsyncadd [#allocation3], 4294967280 }
   0xe   :  { %23 = sfence }
   0xf   :  { %v26_v0 = vld [vmem:[%s121_s1] sm:$0xff]  ;;  %v27_v1 = vld [vmem:[%s121_s1 + $0x8] sm:$0xff]  ;;  %s24_s0 = sld [smem:[#allocation2]]  ;;  %s65_s18 = sld [smem:[#allocation2 + $0x1]] }
  0x10   :  { %v28_v2 = vsub.f32 0.0, %v26_v0  ;;  %v29_v3 = vsub.f32 0.0, %v27_v1 }
  0x12   :  { %v30_v4 = vmul.f32 1.442695, %v28_v2  ;;  %v32_v5 = vmul.f32 1.442695, %v29_v3 }
  0x14   :  { %67 = vpow2.f32 %v30_v4 }
  0x15   :  { %69 = vpow2.f32 %v32_v5  ;;  %v34_v6 = vstv %s24_s0  ;;  %v55_v24 = vstv %s65_s18 }
  0x1e   :  { %v68_v7 = vpop.eup %67 }
  0x1f   :  { %v70_v8 = vpop.eup %69  ;;  %v35_v9 = vmul.f32 %v68_v7, %v34_v6 }
  0x20   :  { %v36_v10 = vmul.f32 %v70_v8, %v34_v6 }
  0x21   :  { %v37_v11 = vadd.f32 1.0, %v35_v9  ;;  %v40_v13 = vmul.f32 -0.5, %v35_v9  ;;  %v43_v16 = vand.u32 2147483647, %v35_v9 }
  0x22   :  { %v46_v12 = vadd.f32 1.0, %v36_v10  ;;  %v49_v14 = vmul.f32 -0.5, %v36_v10  ;;  %v52_v18 = vand.u32 2147483647, %v36_v10 }
  0x23   :  { %71 = vlog2.f32 %v37_v11  ;;  %v41_v15 = vadd.f32 1.0, %v40_v13  ;;  %vm44_vm0 = vcmp.lt.f32.partialorder %v43_v16, 0.0004427343 }
  0x24   :  { %73 = vlog2.f32 %v46_v12  ;;  %v50_v17 = vadd.f32 1.0, %v49_v14  ;;  %vm53_vm1 = vcmp.lt.f32.partialorder %v52_v18, 0.0004427343 }
  0x25   :  { %v42_v19 = vmul.f32 %v41_v15, %v35_v9 }
  0x26   :  { %v51_v21 = vmul.f32 %v50_v17, %v36_v10 }
  0x2d   :  { %v72_v20 = vpop.eup %71 }
  0x2e   :  { %v74_v22 = vpop.eup %73  ;;  %v39_v23 = vmul.f32 0.6931472, %v72_v20 }
  0x2f   :  { %v48_v25 = vmul.f32 0.6931472, %v74_v22 }
  0x30   :  { %v45_v26 = vsel %vm44_vm0, %v42_v19, %v39_v23 }
  0x31   :  { %v56_v27 = vmul.f32 %v55_v24, %v45_v26  ;;  %v54_v28 = vsel %vm53_vm1, %v51_v21, %v48_v25 }
  0x32   :  { %v57_v29 = vmul.f32 %v55_v24, %v54_v28 }
  0x33   :  { %58 = vst [vmem:[%s122_s2] sm:$0xff] %v56_v27 }
  0x34   :  { %59 = vst [vmem:[%s122_s2 + $0x8] sm:$0xff] %v57_v29 }
  0x35   :  { %64 = vsyncpa [#allocation3], 1 }

</bundles_post_ra>
